<compile_context>
chip_gen: v7x
topology: tpu7x:2x2x1
jax: 0.10.0
libtpu: 0.0.40
codegen_flags: <defaults>
</compile_context>

<pallas_src>
import functools

import jax
import jax.numpy as jnp
from jax.experimental import pallas as pl
from jax.experimental.pallas import tpu as pltpu

K_IN = 784                    # fc1 fan-in
H1, H2, OUT = 128, 64, 10
DEFAULT_BLOCK_B = 2048        # batch tile on v6e / v7x (32 MiB scoped VMEM)
V5E_BLOCK_B = 1024            # v5e: 16 MiB default scoped VMEM


def _round_up(x, m):
    return ((x + m - 1) // m) * m


def _default_block_b():
    """Pick the batch tile based on the attached TPU generation's scoped VMEM."""
    try:
        kind = jax.devices()[0].device_kind.lower()
    except Exception:  # pragma: no cover - no device info available
        return V5E_BLOCK_B
    if "v5e" in kind or "v5 lite" in kind or "v5lite" in kind:
        return V5E_BLOCK_B
    return DEFAULT_BLOCK_B


def _digit_mlp_kernel(x_ref, w1_ref, b1_ref, w2_ref, b2_ref, w3_ref, b3_ref, out_ref):
    # x tile arrives as f32 straight from HBM; cast to bf16 on the VPU (hidden
    # under the x DMA) so the MXU gets a bf16 feed while accumulating in f32.
    x = x_ref[...].astype(jnp.bfloat16)                               # (TILE_B, 784)

    # fc1 + ReLU  (dropout is identity in eval mode)
    h1 = jnp.dot(x, w1_ref[...], preferred_element_type=jnp.float32) + b1_ref[...]
    h1 = jnp.maximum(h1, 0.0)                                         # (TILE_B, 128) f32

    # fc2 + ReLU
    h2 = jnp.dot(h1.astype(jnp.bfloat16), w2_ref[...],
                 preferred_element_type=jnp.float32) + b2_ref[...]
    h2 = jnp.maximum(h2, 0.0)                                         # (TILE_B, 64) f32

    # fc3
    logits = jnp.dot(h2.astype(jnp.bfloat16), w3_ref[...],
                     preferred_element_type=jnp.float32) + b3_ref[...]  # (TILE_B, 10) f32

    # log_softmax over dim=1 (numerically stable, f32)
    m = jnp.max(logits, axis=-1, keepdims=True)
    shifted = logits - m
    lse = jnp.log(jnp.sum(jnp.exp(shifted), axis=-1, keepdims=True))
    out_ref[...] = (shifted - lse).astype(out_ref.dtype)


@functools.partial(jax.jit, static_argnames=("block_b",))
def _digit_model_forward_impl(x, w1, b1, w2, b2, w3, b3, *, block_b):
    B = x.shape[0]

    # Weights feed the MXU in bf16 (no-op if prepare_params() already cast them).
    w1 = w1.astype(jnp.bfloat16)
    w2 = w2.astype(jnp.bfloat16)
    w3 = w3.astype(jnp.bfloat16)

    # Batch tiling: tile is a multiple of 16 (bf16 sublane packing of the
    # in-kernel cast) and divides the padded batch.
    tile_b = min(block_b, _round_up(B, 16))
    b_pad = _round_up(B, tile_b)
    if b_pad != B:
        x = jnp.pad(x, ((0, b_pad - B), (0, 0)))
    grid = (b_pad // tile_b,)

    # Constant index maps -> weights/biases stay VMEM-resident across grid steps.
    const = lambda shape: pl.BlockSpec(shape, lambda i: tuple(0 for _ in shape))

    out = pl.pallas_call(
        _digit_mlp_kernel,
        out_shape=jax.ShapeDtypeStruct((b_pad, OUT), jnp.float32),
        grid=grid,
        in_specs=[
            pl.BlockSpec((tile_b, K_IN), lambda i: (i, 0)),   # f32 x tile (pipelined)
            const((K_IN, H1)), const((1, H1)),                # fc1
            const((H1, H2)), const((1, H2)),                  # fc2
            const((H2, OUT)), const((1, OUT)),                # fc3
        ],
        out_specs=pl.BlockSpec((tile_b, OUT), lambda i: (i, 0)),
        compiler_params=pltpu.CompilerParams(
            dimension_semantics=("parallel",),
        ),
    )(x, w1, b1, w2, b2, w3, b3)

    return out[:B]


def digit_model_forward(x, params, *, block_b=None):
    """x: (B, 784) float32. params: dict of w1,b1,w2,b2,w3,b3. Returns (B, 10) f32 log-probs."""
    if block_b is None:
        block_b = _default_block_b()
    return _digit_model_forward_impl(
        x, params["w1"], params["b1"], params["w2"], params["b2"],
        params["w3"], params["b3"], block_b=block_b)


def init_params(key):
    """Deterministic PyTorch-Linear-style init: U(-1/sqrt(fan_in), 1/sqrt(fan_in))."""
    def linear(key, fan_in, fan_out):
        kw, kb = jax.random.split(key)
        bound = 1.0 / (fan_in ** 0.5)
        w = jax.random.uniform(kw, (fan_in, fan_out), jnp.float32, -bound, bound)
        b = jax.random.uniform(kb, (1, fan_out), jnp.float32, -bound, bound)
        return w, b

    k1, k2, k3 = jax.random.split(key, 3)
    w1, b1 = linear(k1, K_IN, H1)
    w2, b2 = linear(k2, H1, H2)
    w3, b3 = linear(k3, H2, OUT)
    return {"w1": w1, "b1": b1, "w2": w2, "b2": b2, "w3": w3, "b3": b3}


def prepare_params(params):
    """One-time weight cast to bf16 outside the per-call path (biases stay f32)."""
    return {
        "w1": params["w1"].astype(jnp.bfloat16),
        "w2": params["w2"].astype(jnp.bfloat16),
        "w3": params["w3"].astype(jnp.bfloat16),
        "b1": params["b1"], "b2": params["b2"], "b3": params["b3"],
    }


def _reference_forward(x, params):
    """Pure-JAX reference mimicking the kernel's bf16-input / f32-accumulate math."""
    bf = lambda a: a.astype(jnp.bfloat16).astype(jnp.float32)
    h1 = jnp.maximum(jnp.dot(bf(x), bf(params["w1"])) + params["b1"], 0.0)
    h2 = jnp.maximum(jnp.dot(bf(h1), bf(params["w2"])) + params["b2"], 0.0)
    logits = jnp.dot(bf(h2), bf(params["w3"])) + params["b3"]
    return jax.nn.log_softmax(logits, axis=-1)


if __name__ == "__main__":
    key = jax.random.PRNGKey(0)
    k_params, k_x = jax.random.split(key)

    params_f32 = init_params(k_params)
    params = prepare_params(params_f32)        # one-time bf16 weight cast

    B = 8
    x = jax.random.normal(k_x, (B, K_IN), jnp.float32)

    y = digit_model_forward(x, params)
    y = jax.block_until_ready(y)

    # sanity: shape, normalization, and agreement with a bf16-rounded reference
    assert y.shape == (B, OUT)
    row_sums = jnp.sum(jnp.exp(y), axis=1)
    assert jnp.allclose(row_sums, 1.0, atol=1e-4)
    y_ref = _reference_forward(x, params_f32)
    assert jnp.allclose(y, y_ref, atol=1e-2), float(jnp.max(jnp.abs(y - y_ref)))

    print("KERNEL_OK")
</pallas_src>

<mosaic_0001>
module attributes {stable_mosaic.version = 11 : i64} {
  func.func @_digit_mlp_kernel(%arg0: i32, %arg1: memref<16x784xf32, #tpu.memory_space<vmem>>, %arg2: memref<784x128xbf16, #tpu.memory_space<vmem>>, %arg3: memref<1x128xf32, #tpu.memory_space<vmem>>, %arg4: memref<128x64xbf16, #tpu.memory_space<vmem>>, %arg5: memref<1x64xf32, #tpu.memory_space<vmem>>, %arg6: memref<64x10xbf16, #tpu.memory_space<vmem>>, %arg7: memref<1x10xf32, #tpu.memory_space<vmem>>, %arg8: memref<16x10xf32, #tpu.memory_space<vmem>>) attributes {dimension_semantics = [#tpu.dimension_semantics<parallel>], iteration_bounds = array<i64: 1>, scalar_prefetch = 0 : i64, scratch_operands = 0 : i64, tpu.core_type = #tpu.core_type<tc>, window_params = [{transform_indices = @transform_0, window_bounds = array<i64: 16, 784>}, {pipeline_mode = #tpu.pipeline_mode<synchronous>, transform_indices = @transform_1, window_bounds = array<i64: 784, 128>}, {pipeline_mode = #tpu.pipeline_mode<synchronous>, transform_indices = @transform_2, window_bounds = array<i64: 1, 128>}, {pipeline_mode = #tpu.pipeline_mode<synchronous>, transform_indices = @transform_3, window_bounds = array<i64: 128, 64>}, {pipeline_mode = #tpu.pipeline_mode<synchronous>, transform_indices = @transform_4, window_bounds = array<i64: 1, 64>}, {pipeline_mode = #tpu.pipeline_mode<synchronous>, transform_indices = @transform_5, window_bounds = array<i64: 64, 10>}, {pipeline_mode = #tpu.pipeline_mode<synchronous>, transform_indices = @transform_6, window_bounds = array<i64: 1, 10>}, {transform_indices = @transform_7, window_bounds = array<i64: 16, 10>}]} {
    %c0 = arith.constant 0 : index
    %c0_0 = arith.constant 0 : index
    %0 = vector.load %arg1[%c0, %c0_0] : memref<16x784xf32, #tpu.memory_space<vmem>>, vector<16x784xf32>
    %1 = arith.truncf %0 : vector<16x784xf32> to vector<16x784xbf16>
    %c0_1 = arith.constant 0 : index
    %c0_2 = arith.constant 0 : index
    %2 = vector.load %arg2[%c0_1, %c0_2] : memref<784x128xbf16, #tpu.memory_space<vmem>>, vector<784x128xbf16>
    %cst = arith.constant dense<0.000000e+00> : vector<16x128xf32>
    %3 = tpu.matmul %1, %2, %cst {dimension_numbers = #tpu.dot_dimension_numbers<[1], [0], [0], [1], [0, 0, 1, 1], [], []>} : vector<16x784xbf16>, vector<784x128xbf16>, vector<16x128xf32> -> vector<16x128xf32>
    %c0_3 = arith.constant 0 : index
    %c0_4 = arith.constant 0 : index
    %4 = vector.load %arg3[%c0_3, %c0_4] : memref<1x128xf32, #tpu.memory_space<vmem>>, vector<1x128xf32>
    %5 = vector.broadcast %4 : vector<1x128xf32> to vector<16x128xf32>
    %6 = arith.addf %3, %5 : vector<16x128xf32>
    %cst_5 = arith.constant 0.000000e+00 : f32
    %7 = vector.broadcast %cst_5 : f32 to vector<16x128xf32>
    %8 = arith.maximumf %6, %7 : vector<16x128xf32>
    %9 = arith.truncf %8 : vector<16x128xf32> to vector<16x128xbf16>
    %c0_6 = arith.constant 0 : index
    %c0_7 = arith.constant 0 : index
    %10 = vector.load %arg4[%c0_6, %c0_7] : memref<128x64xbf16, #tpu.memory_space<vmem>>, vector<128x64xbf16>
    %cst_8 = arith.constant dense<0.000000e+00> : vector<16x64xf32>
    %11 = tpu.matmul %9, %10, %cst_8 {dimension_numbers = #tpu.dot_dimension_numbers<[1], [0], [0], [1], [0, 0, 1, 1], [], []>} : vector<16x128xbf16>, vector<128x64xbf16>, vector<16x64xf32> -> vector<16x64xf32>
    %c0_9 = arith.constant 0 : index
    %c0_10 = arith.constant 0 : index
    %12 = vector.load %arg5[%c0_9, %c0_10] : memref<1x64xf32, #tpu.memory_space<vmem>>, vector<1x64xf32>
    %13 = vector.broadcast %12 : vector<1x64xf32> to vector<16x64xf32>
    %14 = arith.addf %11, %13 : vector<16x64xf32>
    %cst_11 = arith.constant 0.000000e+00 : f32
    %15 = vector.broadcast %cst_11 : f32 to vector<16x64xf32>
    %16 = arith.maximumf %14, %15 : vector<16x64xf32>
    %17 = arith.truncf %16 : vector<16x64xf32> to vector<16x64xbf16>
    %c0_12 = arith.constant 0 : index
    %c0_13 = arith.constant 0 : index
    %18 = vector.load %arg6[%c0_12, %c0_13] : memref<64x10xbf16, #tpu.memory_space<vmem>>, vector<64x10xbf16>
    %cst_14 = arith.constant dense<0.000000e+00> : vector<16x10xf32>
    %19 = tpu.matmul %17, %18, %cst_14 {dimension_numbers = #tpu.dot_dimension_numbers<[1], [0], [0], [1], [0, 0, 1, 1], [], []>} : vector<16x64xbf16>, vector<64x10xbf16>, vector<16x10xf32> -> vector<16x10xf32>
    %c0_15 = arith.constant 0 : index
    %c0_16 = arith.constant 0 : index
    %20 = vector.load %arg7[%c0_15, %c0_16] : memref<1x10xf32, #tpu.memory_space<vmem>>, vector<1x10xf32>
    %21 = vector.broadcast %20 : vector<1x10xf32> to vector<16x10xf32>
    %22 = arith.addf %19, %21 : vector<16x10xf32>
    %cst_17 = arith.constant dense<0xFF800000> : vector<16xf32>
    %23 = vector.multi_reduction <maximumf>, %22, %cst_17 [1] : vector<16x10xf32> to vector<16xf32>
    %24 = vector.shape_cast %23 : vector<16xf32> to vector<16x1xf32>
    %25 = vector.broadcast %24 : vector<16x1xf32> to vector<16x10xf32>
    %26 = arith.subf %22, %25 : vector<16x10xf32>
    %27 = math.exp %26 : vector<16x10xf32>
    %cst_18 = arith.constant dense<0.000000e+00> : vector<16xf32>
    %28 = vector.multi_reduction <add>, %27, %cst_18 [1] : vector<16x10xf32> to vector<16xf32>
    %29 = vector.shape_cast %28 : vector<16xf32> to vector<16x1xf32>
    %30 = math.log %29 : vector<16x1xf32>
    %31 = vector.broadcast %30 : vector<16x1xf32> to vector<16x10xf32>
    %32 = arith.subf %26, %31 : vector<16x10xf32>
    %c0_19 = arith.constant 0 : index
    %c0_20 = arith.constant 0 : index
    %33 = vector.load %arg8[%c0_19, %c0_20] : memref<16x10xf32, #tpu.memory_space<vmem>>, vector<16x10xf32>
    tpu.vector_store %arg8[%c0_19, %c0_20], %32 {strides = array<i32>} : memref<16x10xf32, #tpu.memory_space<vmem>>, vector<16x10xf32>,
    return
  }
  func.func @transform_0(%arg0: i32) -> (i32, i32) {
    %c0_i32 = arith.constant 0 : i32
    %c0_i32_0 = arith.constant 0 : i32
    return %arg0, %c0_i32 : i32, i32
  }
  func.func @transform_1(%arg0: i32) -> (i32, i32) {
    %c0_i32 = arith.constant 0 : i32
    %c0_i32_0 = arith.constant 0 : i32
    %c0_i32_1 = arith.constant 0 : i32
    return %c0_i32, %c0_i32_0 : i32, i32
  }
  func.func @transform_2(%arg0: i32) -> (i32, i32) {
    %c0_i32 = arith.constant 0 : i32
    %c0_i32_0 = arith.constant 0 : i32
    %c0_i32_1 = arith.constant 0 : i32
    return %c0_i32, %c0_i32_0 : i32, i32
  }
  func.func @transform_3(%arg0: i32) -> (i32, i32) {
    %c0_i32 = arith.constant 0 : i32
    %c0_i32_0 = arith.constant 0 : i32
    %c0_i32_1 = arith.constant 0 : i32
    return %c0_i32, %c0_i32_0 : i32, i32
  }
  func.func @transform_4(%arg0: i32) -> (i32, i32) {
    %c0_i32 = arith.constant 0 : i32
    %c0_i32_0 = arith.constant 0 : i32
    %c0_i32_1 = arith.constant 0 : i32
    return %c0_i32, %c0_i32_0 : i32, i32
  }
  func.func @transform_5(%arg0: i32) -> (i32, i32) {
    %c0_i32 = arith.constant 0 : i32
    %c0_i32_0 = arith.constant 0 : i32
    %c0_i32_1 = arith.constant 0 : i32
    return %c0_i32, %c0_i32_0 : i32, i32
  }
  func.func @transform_6(%arg0: i32) -> (i32, i32) {
    %c0_i32 = arith.constant 0 : i32
    %c0_i32_0 = arith.constant 0 : i32
    %c0_i32_1 = arith.constant 0 : i32
    return %c0_i32, %c0_i32_0 : i32, i32
  }
  func.func @transform_7(%arg0: i32) -> (i32, i32) {
    %c0_i32 = arith.constant 0 : i32
    %c0_i32_0 = arith.constant 0 : i32
    return %arg0, %c0_i32 : i32, i32
  }
}

</mosaic_0001>

<bundles_post_ra>
// kernel: _digit_model_forward_impl.1
= control target key start
LH: loop header
LB: loop body
LE: loop exit
PB: predicated region body
PF: predicated region fallthrough
CT: control target
= control target key end

     0   :  { %12 = vsyncpa [#allocation3], 0  ;;  %s1147_s24 = smov [#allocation2]   ;;  %s1322_s0 = inlined_call_operand.vmem [shape: f32[16,784], index: 0, kind: input, shape index: {}]   ;;  %s1323_s1 = inlined_call_operand.hbm [shape: bf16[784,128], index: 1, kind: input, shape index: {}]   ;;  %s1324_s2 = inlined_call_operand.vmem [shape: f32[1,128], index: 2, kind: input, shape index: {}]   ;;  %s1325_s3 = inlined_call_operand.vmem [shape: bf16[128,64], index: 3, kind: input, shape index: {}]   ;;  %s1326_s4 = inlined_call_operand.vmem [shape: f32[1,64], index: 4, kind: input, shape index: {}]   ;;  %s1327_s5 = inlined_call_operand.vmem [shape: bf16[64,10], index: 5, kind: input, shape index: {}]   ;;  %s1328_s6 = inlined_call_operand.vmem [shape: f32[1,10], index: 6, kind: input, shape index: {}]   ;;  %s1329_s7 = inlined_call_operand.vmem [shape: f32[16,10], index: 7, kind: output, shape index: {}]  }
   0x1   :  { %s20_s25 = sshll.u32 %s1147_s24, 4  ;;  %s1123_s28 = scalar_lea.hbm %s1323_s1, 6272  ;;  %s21_s25 = int_to_ptr.vmem [resolvable:$true] %s20_s25 }
   0x2   :  { %p1124_p0 = scmp.ne.s32.totalorder %s1323_s1, %s1123_s28  ;;  %p1127_p1 = scmp.lt.u32.totalorder %s1123_s28, %s1323_s1 }
   0x4   :  { %p1129_p2 = pnand %p1127_p1, %p1124_p0 }
   0x6   :  { %1132 = shalt.err (!%p1129_p2)
}
   0x7   :  { %s1133_s10 = scalar_lea.vmem %s21_s25, 6272  ;;  %p1138_p4 = scmp.lt.s32.totalorder %s21_s25, %s21_s25 }
   0x8   :  { %p1134_p3 = scmp.ne.s32.totalorder %s21_s25, %s1133_s10  ;;  %p1139_p5 = scmp.lt.s32.totalorder %s1133_s10, %s1133_s10 }
   0xa   :  { %p1140_p6 = por %p1139_p5, %p1138_p4 }
   0xc   :  { %p1141_p7 = pnand %p1140_p6, %p1134_p3 }
   0xe   :  { %1144 = shalt.err (!%p1141_p7)
}
   0xf   :  { %s1148_s11 = smov 64   ;;  %s1149_s12 = smov 4  }
  0x10   :  { %26 = dma.hbm_to_vmem [thread:$0]  %s1323_s1, 6272, %s21_s25, [#allocation3], %s1148_s11, %s1148_s11, %s1149_s12  }
  0x11   :  { %1145 = dma.done.wait [#allocation3], 6272  }
  0x12   :  { %1146 = vsyncadd [#allocation3], 4294961024  ;;  %v1054_v0 = vld [vmem:[#allocation2 + $0x40] sm:$0xff]   ;;  %v1058_v4 = vld [vmem:[#allocation2 + $0x48] sm:$0xff]   ;;  %v1150_v43 = vmov 0.0   ;;  %vm1151_vm0 = vmmov 0  }
  0x13   :  { %v1055_v1 = vld [vmem:[#allocation2] sm:$0xff]   ;;  %929 = vmatprep.subr.bf16.mxu0 %v1054_v0  ;;  %v1059_v5 = vld [vmem:[#allocation2 + $0x8] sm:$0xff]   ;;  %v1062_v8 = vld [vmem:[#allocation2 + $0x50] sm:$0xff]   ;;  %vm461_vm1 = vcmask 130048   ;;  %vm786_vm2 = vcmask 523264   ;;  %vm831_vm3 = vcmask 80896  }
  0x14   :  { %v1056_v2 = vld [vmem:[#allocation2 + $0xc0] sm:$0xff]   ;;  %930 = vmatpush3.bf16.msra.mxu0 %v1055_v1  ;;  %v1060_v6 = vld [vmem:[#allocation2 + $0xc8] sm:$0xff]   ;;  %v1063_v9 = vld [vmem:[#allocation2 + $0x10] sm:$0xff]  }
  0x15   :  { %v1057_v3 = vld [vmem:[#allocation2 + $0x80] sm:$0xff]   ;;  %951 = vmatprep.subr.bf16.mxu1 %v1056_v2  ;;  %931 = vmatprep.subr.bf16.mxu0 %v1058_v4  ;;  %v1061_v7 = vld [vmem:[#allocation2 + $0x88] sm:$0xff]   ;;  %v1064_v10 = vld [vmem:[#allocation2 + $0xd0] sm:$0xff]  }
  0x16   :  { %952 = vmatpush3.bf16.msra.mxu1 %v1057_v3  ;;  %v1065_v11 = vld [vmem:[#allocation2 + $0x90] sm:$0xff]   ;;  %v1066_v12 = vld [vmem:[#allocation2 + $0x58] sm:$0xff]   ;;  %v1070_v16 = vld [vmem:[#allocation2 + $0x60] sm:$0xff]  }
  0x17   :  { %953 = vmatprep.subr.bf16.mxu1 %v1060_v6  ;;  %v1067_v13 = vld [vmem:[#allocation2 + $0x18] sm:$0xff]   ;;  %v1071_v17 = vld [vmem:[#allocation2 + $0x20] sm:$0xff]   ;;  %v1074_v20 = vld [vmem:[#allocation2 + $0x68] sm:$0xff]  }
  0x18   :  { %932 = vmatpush3.bf16.msra.mxu0 %v1059_v5  ;;  %v1068_v14 = vld [vmem:[#allocation2 + $0xd8] sm:$0xff]   ;;  %v1072_v18 = vld [vmem:[#allocation2 + $0xe0] sm:$0xff]   ;;  %v1075_v21 = vld [vmem:[#allocation2 + $0x28] sm:$0xff]  }
  0x19   :  { %933 = vmatprep.subr.bf16.mxu0 %v1062_v8  ;;  %v1069_v15 = vld [vmem:[#allocation2 + $0x98] sm:$0xff]   ;;  %v1073_v19 = vld [vmem:[#allocation2 + $0xa0] sm:$0xff]   ;;  %v1076_v22 = vld [vmem:[#allocation2 + $0xe8] sm:$0xff]  }
  0x1a   :  { %954 = vmatpush3.bf16.msra.mxu1 %v1061_v7  ;;  %v1077_v23 = vld [vmem:[#allocation2 + $0xa8] sm:$0xff]   ;;  %v1078_v24 = vld [vmem:[#allocation2 + $0x70] sm:$0xff]   ;;  %v1082_v28 = vld [vmem:[#allocation2 + $0x78] sm:$0xff]  }
  0x1b   :  { %955 = vmatprep.subr.bf16.mxu1 %v1064_v10  ;;  %v1079_v25 = vld [vmem:[#allocation2 + $0x30] sm:$0xff]   ;;  %v1083_v29 = vld [vmem:[#allocation2 + $0x38] sm:$0xff]   ;;  %v42_v31 = vld [vmem:[%s1322_s0 + $0x8] sm:$0xff] }
  0x1c   :  { %934 = vmatpush3.bf16.msra.mxu0 %v1063_v9  ;;  %v1080_v26 = vld [vmem:[#allocation2 + $0xf0] sm:$0xff]   ;;  %v1084_v30 = vld [vmem:[#allocation2 + $0xf8] sm:$0xff]   ;;  %v49_v32 = vld [vmem:[%s1322_s0 + $0x40] sm:$0xff] }
  0x1d   :  { %935 = vmatprep.subr.bf16.mxu0 %v1066_v12  ;;  %v1081_v27 = vld [vmem:[#allocation2 + $0xb0] sm:$0xff]   ;;  %v56_v33 = vpack.c.bf16 %v49_v32, %v42_v31  ;;  %v1085_v34 = vld [vmem:[#allocation2 + $0xb8] sm:$0xff]   ;;  %v41_v35 = vld [vmem:[%s1322_s0] sm:$0xff] }
  0x1e   :  { %956 = vmatpush3.bf16.msra.mxu1 %v1065_v11  ;;  %v48_v36 = vld [vmem:[%s1322_s0 + $0x38] sm:$0xff]  ;;  %v1086_v38 = vld [vmem:[#allocation2 + $0x140] sm:$0xff]   ;;  %v51_v40 = vld [vmem:[%s1322_s0 + $0x50] sm:$0xff] }
  0x1f   :  { %957 = vmatprep.subr.bf16.mxu1 %v1068_v14  ;;  %497 = vmatprep.mubr.bf16.mxu0 %v56_v33  ;;  %v55_v37 = vpack.c.bf16 %v48_v36, %v41_v35  ;;  %v44_v39 = vld [vmem:[%s1322_s0 + $0x18] sm:$0xff]  ;;  %v1087_v42 = vld [vmem:[#allocation2 + $0x100] sm:$0xff]   ;;  %v43_v44 = vld [vmem:[%s1322_s0 + $0x10] sm:$0xff] }
  0x20   :  { %936 = vmatpush3.bf16.msra.mxu0 %v1067_v13  ;;  %v58_v41 = vpack.c.bf16 %v51_v40, %v44_v39  ;;  %v50_v45 = vld [vmem:[%s1322_s0 + $0x48] sm:$0xff]  ;;  %v1090_v49 = vld [vmem:[#allocation2 + $0x150] sm:$0xff]   ;;  %v1092_v51 = vld [vmem:[#allocation2 + $0x158] sm:$0xff]  }
  0x21   :  { %937 = vmatprep.subr.bf16.mxu0 %v1070_v16  ;;  %v57_v46 = vpack.c.bf16 %v50_v45, %v43_v44  ;;  %v1088_v47 = vld [vmem:[#allocation2 + $0x148] sm:$0xff]   ;;  %v1091_v50 = vld [vmem:[#allocation2 + $0x110] sm:$0xff]   ;;  %v1093_v52 = vld [vmem:[#allocation2 + $0x118] sm:$0xff]  }
  0x22   :  { %958 = vmatpush3.bf16.msra.mxu1 %v1069_v15  ;;  %538 = vmatprep.mubr.bf16.mxu1 %v58_v41  ;;  %v1089_v48 = vld [vmem:[#allocation2 + $0x108] sm:$0xff]   ;;  %v1094_v53 = vld [vmem:[#allocation2 + $0x160] sm:$0xff]   ;;  %v1098_v59 = vld [vmem:[#allocation2 + $0x170] sm:$0xff]  }
  0x23   :  { %959 = vmatprep.subr.bf16.mxu1 %v1072_v18  ;;  %v1095_v54 = vld [vmem:[#allocation2 + $0x120] sm:$0xff]   ;;  %v1096_v55 = vld [vmem:[#allocation2 + $0x168] sm:$0xff]   ;;  %v47_v62 = vld [vmem:[%s1322_s0 + $0x30] sm:$0xff] }
  0x24   :  { %938 = vmatpush3.bf16.msra.mxu0 %v1071_v17  ;;  %v1102_v56 = vld [vmem:[#allocation2 + $0x180] sm:$0xff]   ;;  %v46_v57 = vld [vmem:[%s1322_s0 + $0x28] sm:$0xff]  ;;  %v1099_v1 = vld [vmem:[#allocation2 + $0x130] sm:$0xff]  }
  0x25   :  { %939 = vmatprep.subr.bf16.mxu0 %v1074_v20  ;;  %v1097_v58 = vld [vmem:[#allocation2 + $0x128] sm:$0xff]   ;;  %v53_v60 = vld [vmem:[%s1322_s0 + $0x60] sm:$0xff]  ;;  %v1100_v2 = vld [vmem:[#allocation2 + $0x178] sm:$0xff]  }
  0x26   :  { %960 = vmatpush3.bf16.msra.mxu1 %v1073_v19  ;;  %v60_v61 = vpack.c.bf16 %v53_v60, %v46_v57  ;;  %v54_v63 = vld [vmem:[%s1322_s0 + $0x68] sm:$0xff]  ;;  %v1101_v3 = vld [vmem:[#allocation2 + $0x138] sm:$0xff]   ;;  %v45_v4 = vld [vmem:[%s1322_s0 + $0x20] sm:$0xff] }
  0x27   :  { %961 = vmatprep.subr.bf16.mxu1 %v1076_v22  ;;  %v61_v0 = vpack.c.bf16 %v54_v63, %v47_v62  ;;  %v52_v5 = vld [vmem:[%s1322_s0 + $0x58] sm:$0xff]  ;;  %v1103_v7 = vld [vmem:[%s1325_s3] sm:$0xff]   ;;  %v1104_v8 = vld [vmem:[%s1325_s3 + $0x8] sm:$0xff]  }
  0x28   :  { %940 = vmatpush3.bf16.msra.mxu0 %v1075_v21  ;;  %v59_v6 = vpack.c.bf16 %v52_v5, %v45_v4  ;;  %v1105_v9 = vld [vmem:[%s1325_s3 + $0x10] sm:$0xff]   ;;  %v1106_v10 = vld [vmem:[%s1325_s3 + $0x18] sm:$0xff]   ;;  %v1107_v11 = vld [vmem:[%s1325_s3 + $0x20] sm:$0xff]  }
  0x29   :  { %941 = vmatprep.subr.bf16.mxu0 %v1078_v24  ;;  %v1108_v12 = vld [vmem:[%s1325_s3 + $0x28] sm:$0xff]   ;;  %v1109_v13 = vld [vmem:[%s1325_s3 + $0x30] sm:$0xff]   ;;  %v1110_v14 = vld [vmem:[%s1325_s3 + $0x38] sm:$0xff]  }
  0x2a   :  { %962 = vmatpush3.bf16.msra.mxu1 %v1077_v23  ;;  %v1111_v15 = vld [vmem:[%s1327_s5] sm:$0xff]   ;;  %v1112_v16 = vld [vmem:[%s1327_s5 + $0x8] sm:$0xff]  }
  0x2b   :  { %963 = vmatprep.subr.bf16.mxu1 %v1080_v26  ;;  %v863_v18 = vld [vmem:[%s1324_s2] ss:$0 sm:$0xff] }
  0x2c   :  { %942 = vmatpush3.bf16.msra.mxu0 %v1079_v25 }
  0x2d   :  { %943 = vmatprep.subr.bf16.mxu0 %v1082_v28 }
  0x2e   :  { %964 = vmatpush3.bf16.msra.mxu1 %v1081_v27 }
  0x2f   :  { %965 = vmatprep.subr.bf16.mxu1 %v1084_v30 }
  0x30   :  { %944 = vmatpush3.bf16.msra.mxu0 %v1083_v29 }
  0x31   :  { %973 = vmatprep.subr.bf16.mxu0 %v1086_v38 }
  0x32   :  { %966 = vmatpush3.bf16.msra.mxu1 %v1085_v34 }
  0x33   :  { %1011 = vmatprep.subr.bf16.mxu1 %v1150_v43  ;;  %498 = vmatmul.mubr.bf16.vlgmr.msra.gmra.mrb[0].mxu0 %v55_v37 }
  0x34   :  { %974 = vmatpush3.bf16.msra.mxu0 %v1087_v42  ;;  %579 = vmatprep.mubr.bf16.mxu0 %v60_v61 }
  0x35   :  { %539 = vmatmul.mubr.bf16.vlgmr.msra.gmra.mrb[0].mxu1 %v57_v46  ;;  %975 = vmatprep.subr.bf16.mxu0 %v1088_v47 }
  0x36   :  { %1013 = vmatprep.mubr.msk.bf16.mxu1 %vm1151_vm0, %v1150_v43  ;;  %1012 = vmatpush3.bf16.msra.mxu1 %v1102_v56 }
  0x37   :  { %1017 = vmatprep.subr.bf16.mxu1 %v1150_v43 }
  0x38   :  { %976 = vmatpush3.bf16.msra.mxu0 %v1089_v48 }
  0x39   :  { %977 = vmatprep.subr.bf16.mxu0 %v1090_v49 }
  0x3c   :  { %978 = vmatpush3.bf16.msra.mxu0 %v1091_v50 }
  0x3d   :  { %979 = vmatprep.subr.bf16.mxu0 %v1092_v51  ;;  %1014 = vmatmul.mubr.msk.bf16.vlgmr.msra.gmra.mrb[4].mxu1 %vm461_vm1, %v61_v0 }
  0x3e   :  { %1033 = vmatprep.mubr.msk.bf16.mxu1 %vm1151_vm0, %v1150_v43  ;;  %1018 = vmatpush3.bf16.msra.mxu1 %v1103_v7 }
  0x3f   :  { %1019 = vmatprep.subr.bf16.mxu1 %v1150_v43 }
  0x40   :  { %980 = vmatpush3.bf16.msra.mxu0 %v1093_v52  ;;  %v1113_v52 = vld [vmem:[%s1327_s5 + $0x10] sm:$0xff]  }
  0x41   :  { %981 = vmatprep.subr.bf16.mxu0 %v1094_v53  ;;  %v1114_v53 = vld [vmem:[%s1327_s5 + $0x18] sm:$0xff]  }
  0x42   :  { %1020 = vmatpush3.bf16.msra.mxu1 %v1104_v8 }
  0x43   :  { %1021 = vmatprep.subr.bf16.mxu1 %v1150_v43 }
  0x44   :  { %982 = vmatpush3.bf16.msra.mxu0 %v1095_v54  ;;  %v914_v54 = vld [vmem:[%s1326_s4] ss:$0 sm:$0xff] }
  0x45   :  { %983 = vmatprep.subr.bf16.mxu0 %v1096_v55 }
  0x46   :  { %1022 = vmatpush3.bf16.msra.mxu1 %v1105_v9 }
  0x47   :  { %1023 = vmatprep.subr.bf16.mxu1 %v1150_v43 }
  0x48   :  { %984 = vmatpush3.bf16.msra.mxu0 %v1097_v58 }
  0x49   :  { %985 = vmatprep.subr.bf16.mxu0 %v1098_v59 }
  0x4a   :  { %1024 = vmatpush3.bf16.msra.mxu1 %v1106_v10 }
  0x4b   :  { %1025 = vmatprep.subr.bf16.mxu1 %v1150_v43 }
  0x4c   :  { %986 = vmatpush3.bf16.msra.mxu0 %v1099_v1 }
  0x4d   :  { %987 = vmatprep.subr.bf16.mxu0 %v1100_v2 }
  0x4e   :  { %1026 = vmatpush3.bf16.msra.mxu1 %v1107_v11 }
  0x4f   :  { %1027 = vmatprep.subr.bf16.mxu1 %v1150_v43 }
  0x50   :  { %988 = vmatpush3.bf16.msra.mxu0 %v1101_v3 }
  0x51   :  { %1037 = vmatprep.subr.bf16.mxu0 %v1150_v43 }
  0x52   :  { %1028 = vmatpush3.bf16.msra.mxu1 %v1108_v12 }
  0x53   :  { %580 = vmatmul.mubr.bf16.vlgmr.msra.gmra.mrb[4].mxu0 %v59_v6  ;;  %1029 = vmatprep.subr.bf16.mxu1 %v1150_v43 }
  0x54   :  { %1045 = vmatprep.mubr.msk.bf16.mxu0 %vm1151_vm0, %v1150_v43  ;;  %1038 = vmatpush3.bf16.msra.mxu0 %v1111_v15 }
  0x55   :  { %1039 = vmatprep.subr.bf16.mxu0 %v1150_v43 }
  0x56   :  { %1030 = vmatpush3.bf16.msra.mxu1 %v1109_v13 }
  0x57   :  { %1031 = vmatprep.subr.bf16.mxu1 %v1150_v43 }
  0x58   :  { %1040 = vmatpush3.bf16.msra.mxu0 %v1112_v16 }
  0x59   :  { %1041 = vmatprep.subr.bf16.mxu0 %v1150_v43 }
  0x5a   :  { %1032 = vmatpush3.bf16.msra.mxu1 %v1110_v14 }
  0x5c   :  { %1042 = vmatpush3.bf16.msra.mxu0 %v1113_v52 }
  0x5d   :  { %1043 = vmatprep.subr.bf16.mxu0 %v1150_v43  ;;  %v923_v43 = vld [vmem:[%s1328_s6] ss:$0 sm:$0xff] }
  0x60   :  { %1044 = vmatpush3.bf16.msra.mxu0 %v1114_v53 }
 0x106   :  { %v945_v17 = vpop.f32.mrb[0].mxu0 }
 0x107   :  { %v946_v19 = vpop.f32.mrb[1].mxu0 }
 0x108   :  { %v947_v20 = vadd.f32 %v946_v19, %v945_v17  ;;  %v948_v21 = vpop.f32.mrb[2].mxu0  ;;  %v967_v22 = vpop.f32.mrb[0].mxu1 }
 0x109   :  { %v949_v23 = vpop.f32.mrb[3].mxu0  ;;  %v968_v26 = vpop.f32.mrb[1].mxu1 }
 0x10a   :  { %v500_v24 = vadd.f32 %v947_v20, %v863_v18  ;;  %v950_v25 = vadd.f32 %v949_v23, %v948_v21  ;;  %v969_v27 = vadd.f32 %v968_v26, %v967_v22  ;;  %v970_v28 = vpop.f32.mrb[2].mxu1 }
 0x10b   :  { %v971_v30 = vpop.f32.mrb[3].mxu1 }
 0x10c   :  { %v503_v29 = vadd.f32 %v950_v25, %v863_v18  ;;  %v541_v31 = vadd.f32 %v969_v27, %v500_v24  ;;  %v972_v32 = vadd.f32 %v971_v30, %v970_v28 }
 0x10e   :  { %v544_v33 = vadd.f32 %v972_v32, %v503_v29 }
 0x110   :  { %v622_v34 = vpop.f32.mrb[4].mxu1 }
 0x111   :  { %v1015_v35 = vpop.f32.mrb[5].mxu1 }
 0x112   :  { %v625_v36 = vpop.f32.mrb[6].mxu1 }
 0x113   :  { %v1016_v37 = vpop.f32.mrb[7].mxu1 }
 0x126   :  { %v989_v38 = vpop.f32.mrb[4].mxu0 }
 0x127   :  { %v990_v39 = vpop.f32.mrb[5].mxu0 }
 0x128   :  { %v991_v40 = vadd.f32 %v990_v39, %v989_v38  ;;  %v992_v41 = vpop.f32.mrb[6].mxu0 }
 0x129   :  { %v993_v42 = vpop.f32.mrb[7].mxu0 }
 0x12a   :  { %v582_v44 = vadd.f32 %v991_v40, %v541_v31  ;;  %v994_v45 = vadd.f32 %v993_v42, %v992_v41 }
 0x12c   :  { %v623_v46 = vadd.f32 %v622_v34, %v582_v44  ;;  %v585_v47 = vadd.f32 %v994_v45, %v544_v33 }
 0x12e   :  { %v626_v48 = vadd.f32 %v625_v36, %v585_v47  ;;  %v629_v49 = vmax.f32 %v623_v46, 0.0 }
 0x130   :  { %v630_v50 = vmax.f32 %v626_v48, 0.0 }
 0x132   :  { %v631_v51 = vpack.c.bf16 %v630_v50, %v629_v49 }
 0x134   :  { %1034 = vmatmul.mubr.bf16.vlgmr.msra.gmra.mrb[8].mxu1 %v631_v51 }
 0x207   :  { %v737_v55 = vpop.f32.mrb[8].mxu1 }
 0x208   :  { %v738_v56 = vadd.f32 %v914_v54, %v737_v55  ;;  %v1035_v57 = vpop.f32.mrb[9].mxu1 }
 0x209   :  { %v740_v58 = vpop.f32.mrb[10].mxu1 }
 0x20a   :  { %v741_v59 = vadd.f32 %v914_v54, %v740_v58  ;;  %v1036_v60 = vpop.f32.mrb[11].mxu1  ;;  %v744_v61 = vmax.f32 %v738_v56, 0.0 }
 0x20c   :  { %v745_v62 = vmax.f32 %v741_v59, 0.0 }
 0x20e   :  { %v746_v63 = vpack.c.bf16 %v745_v62, %v744_v61 }
 0x210   :  { %1046 = vmatmul.mubr.msk.bf16.vlgmr.msra.gmra.mrb[8].mxu0 %vm786_vm2, %v746_v63 }
 0x2e3   :  { %v824_v0 = vpop.f32.mrb[8].mxu0 }
 0x2e4   :  { %v825_v1 = vadd.f32 %v923_v43, %v824_v0  ;;  %v1047_v2 = vpop.f32.mrb[9].mxu0 }
 0x2e5   :  { %v827_v3 = vpop.f32.mrb[10].mxu0 }
 0x2e6   :  { %v828_v4 = vadd.f32 %v923_v43, %v827_v3  ;;  %v1048_v5 = vpop.f32.mrb[11].mxu0  ;;  %v832_v6 = vsel %vm831_vm3, %v825_v1, -inf }
 0x2e7   :  { %833 = vmax.xlane.f32.xlu0 %v832_v6 }
 0x2e8   :  { %v835_v7 = vsel %vm831_vm3, %v828_v4, -inf }
 0x2eb   :  { %836 = vmax.xlane.f32.xlu0 %v835_v7 }
 0x374   :  { %v834_v8 = vpop.xlane.xlu0 %833 }
 0x375   :  { %v838_v9 = vsub.f32 %v825_v1, %v834_v8 }
 0x377   :  { %v840_v10 = vmul.f32 1.442695, %v838_v9 }
 0x378   :  { %v837_v11 = vpop.xlane.xlu0 %836 }
 0x379   :  { %1115 = vpow2.f32 %v840_v10  ;;  %v839_v12 = vsub.f32 %v828_v4, %v837_v11 }
 0x37b   :  { %v842_v13 = vmul.f32 1.442695, %v839_v12 }
 0x37d   :  { %1117 = vpow2.f32 %v842_v13 }
 0x383   :  { %v1116_v14 = vpop.eup %1115 }
 0x384   :  { %v844_v15 = vsel %vm831_vm3, %v1116_v14, 0.0 }
 0x385   :  { %845 = vadd.xlane.f32.xlu1 %v844_v15 }
 0x387   :  { %v1118_v16 = vpop.eup %1117 }
 0x388   :  { %v847_v17 = vsel %vm831_vm3, %v1118_v16, 0.0 }
 0x389   :  { %848 = vadd.xlane.f32.xlu1 %v847_v17 }
 0x412   :  { %v846_v18 = vpop.xlane.xlu1 %845 }
 0x413   :  { %1119 = vlog2.f32 %v846_v18 }
 0x416   :  { %v849_v19 = vpop.xlane.xlu1 %848 }
 0x417   :  { %1121 = vlog2.f32 %v849_v19 }
 0x41d   :  { %v1120_v20 = vpop.eup %1119 }
 0x41e   :  { %v851_v21 = vmul.f32 0.6931472, %v1120_v20 }
 0x420   :  { %v854_v22 = vsub.f32 %v838_v9, %v851_v21 }
 0x421   :  { %v1122_v23 = vpop.eup %1121 }
 0x422   :  { %856 = vst.msk [vmem:[%s1329_s7] sm:$0xff] %vm831_vm3, %v854_v22  ;;  %v853_v24 = vmul.f32 0.6931472, %v1122_v23 }
 0x424   :  { %v855_v25 = vsub.f32 %v839_v12, %v853_v24 }
 0x426   :  { %857 = vst.msk [vmem:[%s1329_s7 + $0x8] sm:$0xff] %vm831_vm3, %v855_v25 }
 0x427   :  { %862 = vsyncpa [#allocation3], 1 }

</bundles_post_ra>
